<compile_context>
chip_gen: v6e
topology: v6e:2x2x1
jax: 0.10.0
libtpu: 0.0.40
codegen_flags: <defaults>
</compile_context>

<pallas_src>
import jax
import jax.numpy as jnp
from jax.experimental import pallas as pl
from jax.experimental.pallas import tpu as pltpu

NEG_SLOPE = 0.01  # PyTorch LeakyReLU default negative slope


def protonet_kernel(xs_ref, ys_ref, xq_ref, w1_ref, b1_ref, w2_ref, b2_ref,
                    pred_ref):
    # xs_ref: (TB*Ns, inp)   ys_ref: (TB*Ns, C)
    # xq_ref: (TB, Nq, out)  pred_ref: (TB, 4, Nq)
    TBNs, _ = xs_ref.shape
    TB, Nq, out = xq_ref.shape
    Ns = TBNs // TB

    # ---- 2-layer MLP over ALL support rows in one big-M MXU matmul ----------
    h = jnp.dot(xs_ref[...], w1_ref[...],
                preferred_element_type=jnp.float32) + b1_ref[...]
    h = jnp.maximum(h, NEG_SLOPE * h)                       # LeakyReLU (vmax)
    feat = jnp.dot(h, w2_ref[...],
                   preferred_element_type=jnp.float32) + b2_ref[...]  # (TB*Ns, out)

    # ---- class-0 mask: argmax(ys,-1)==0  <=>  ys[:,0] equals the row max ----
    ys = ys_ref[...]
    mask0 = (ys[:, 0:1] >= jnp.max(ys, axis=-1, keepdims=True)
             ).astype(jnp.float32)                          # (TB*Ns, 1)

    # ---- per-batch prototype sums (sum trick: one masked sum + total sum) ---
    # Reshape is layout-preserving when Ns % 8 == 0 (sublane-group aligned).
    feat3 = feat.reshape(TB, Ns, out)
    m3 = mask0.reshape(TB, Ns, 1)
    sum0 = jnp.sum(m3 * feat3, axis=1)                      # (TB, out)
    sum_all = jnp.sum(feat3, axis=1)                        # (TB, out)
    sum1 = sum_all - sum0
    c0 = jnp.sum(m3, axis=1)                                # (TB, 1)
    c1 = float(Ns) - c0
    c0 = jnp.where(c0 == 0.0, 1.0, c0)                      # PyTorch d[d==0]=1
    c1 = jnp.where(c1 == 0.0, 1.0, c1)
    p0 = sum0 / c0                                          # (TB, out)
    p1 = sum1 / c1

    # ---- prob0 = sigmoid(d1 - d0);  d1-d0 = -2 q.(p1-p0) + ||p1||^2-||p0||^2
    diff = p1 - p0                                          # (TB, out)
    bias = jnp.sum(p1 * p1 - p0 * p0, axis=-1, keepdims=True)   # (TB, 1)
    qdot = jnp.sum(xq_ref[...] * diff[:, None, :], axis=-1)     # (TB, Nq)
    delta = bias - 2.0 * qdot                               # (TB, Nq) = d1-d0
    prob0 = 1.0 / (1.0 + jnp.exp(-delta))                   # exp on EUP

    # logits 2,3 are the constant -9999 filler: exp underflows to exactly 0.
    zero = jnp.zeros_like(prob0)
    pred_ref[:, 0, :] = prob0
    pred_ref[:, 1, :] = 1.0 - prob0
    pred_ref[:, 2, :] = zero
    pred_ref[:, 3, :] = zero


def _round_up(x, m):
    return ((x + m - 1) // m) * m


def _padded_f32_bytes(shape):
    """VMEM footprint of an f32 block padded to the (8,128) tile grid."""
    lead = 1
    for d in shape[:-2]:
        lead *= d
    return 4 * lead * _round_up(shape[-2], 8) * _round_up(shape[-1], 128)


def _pick_batch_block(B, Ns, Nq, inp, C, out, hid,
                      budget_bytes=24 * 1024 * 1024):
    """Largest divisor of B whose double-buffered blocks fit the VMEM budget.

    Blocks smaller than the full batch must keep the second-to-last dim of the
    flattened support block a multiple of 8 (the (8,128) BlockSpec rule).
    """
    weight_bytes = 2 * (_padded_f32_bytes((inp, hid)) + _padded_f32_bytes((1, hid))
                        + _padded_f32_bytes((hid, out)) + _padded_f32_bytes((1, out)))
    candidates = [tb for tb in range(1, B + 1)
                  if B % tb == 0 and (tb == B or (tb * Ns) % 8 == 0)]
    best = None
    for tb in candidates:
        per_step = 2 * (_padded_f32_bytes((tb * Ns, inp))
                        + _padded_f32_bytes((tb * Ns, C))
                        + _padded_f32_bytes((tb, Nq, out))
                        + _padded_f32_bytes((tb, 4, Nq)))
        if per_step + weight_bytes <= budget_bytes:
            best = tb                      # keep the largest fitting divisor
    return best if best is not None else candidates[0]


def protonet_forward(xs, ys, xq, w1, b1, w2, b2, *, batch_block=None,
                     vmem_limit_bytes=32 * 1024 * 1024):
    B, Ns, inp_dim = xs.shape
    _, Nq, out_dim = xq.shape
    C = ys.shape[-1]
    hid = w1.shape[1]

    # Wrapper-side layout plumbing: flatten support batch for the MLP matmul.
    xs_flat = xs.reshape(B * Ns, inp_dim)
    ys_flat = ys.reshape(B * Ns, C)

    if batch_block is None:
        batch_block = _pick_batch_block(B, Ns, Nq, inp_dim, C, out_dim, hid)
    assert B % batch_block == 0, (B, batch_block)
    grid = (B // batch_block,)

    out_t = pl.pallas_call(
        protonet_kernel,
        out_shape=jax.ShapeDtypeStruct((B, 4, Nq), jnp.float32),
        grid_spec=pltpu.PrefetchScalarGridSpec(
            num_scalar_prefetch=0,
            grid=grid,
            in_specs=[
                pl.BlockSpec((batch_block * Ns, inp_dim), lambda b: (b, 0)),
                pl.BlockSpec((batch_block * Ns, C), lambda b: (b, 0)),
                pl.BlockSpec((batch_block, Nq, out_dim), lambda b: (b, 0, 0)),
                # weights: constant index_map -> resident across grid steps
                pl.BlockSpec((inp_dim, hid), lambda b: (0, 0)),
                pl.BlockSpec((1, hid), lambda b: (0, 0)),
                pl.BlockSpec((hid, out_dim), lambda b: (0, 0)),
                pl.BlockSpec((1, out_dim), lambda b: (0, 0)),
            ],
            # lane-dense transposed output block: last dim is Nq, not 4
            out_specs=pl.BlockSpec((batch_block, 4, Nq), lambda b: (b, 0, 0)),
        ),
        compiler_params=pltpu.CompilerParams(
            dimension_semantics=("parallel",),
            vmem_limit_bytes=vmem_limit_bytes),
    )(xs_flat, ys_flat, xq, w1, b1, w2, b2)

    # Back to the reference (B, Nq, 4) layout outside the kernel.
    return jnp.transpose(out_t, (0, 2, 1))


def protonet_ref(xs, ys, xq, w1, b1, w2, b2):
    """Pure-JAX mirror of the PyTorch forward, for correctness checking."""
    h = xs @ w1 + b1
    h = jnp.where(h > 0, h, NEG_SLOPE * h)
    feat = h @ w2 + b2                                     # (B, Ns, out)
    labels = jnp.argmax(ys, -1)
    id0 = (labels == 0).astype(jnp.float32)[..., None]     # (B, Ns, 1)
    id1 = 1.0 - id0
    d0 = jnp.sum(id0, 1, keepdims=True)
    d0 = jnp.where(d0 == 0, 1.0, d0)
    d1 = jnp.sum(id1, 1, keepdims=True)
    d1 = jnp.where(d1 == 0, 1.0, d1)
    p0 = jnp.einsum('bnd,bnk->bdk', feat, id0) / d0        # (B, out, 1)
    p1 = jnp.einsum('bnd,bnk->bdk', feat, id1) / d1
    ps = jnp.concatenate([p0, p1], -1)                     # (B, out, 2)
    ps = jnp.transpose(ps, (0, 2, 1))[:, None]             # (B, 1, 2, out)
    xqe = xq[:, :, None]                                   # (B, Nq, 1, out)
    d = (ps - xqe) * (ps - xqe)
    pred = jnp.sum(d, -1)                                  # (B, Nq, 2)
    pred = jnp.concatenate([pred, 9999.0 * jnp.ones_like(pred)], -1)
    return jax.nn.softmax(-pred, -1)


if __name__ == "__main__":
    B, Ns, Nq = 4, 8, 8
    inp_dim, hidden_dim, out_dim = 16, 32, 8
    num_classes = 2

    key = jax.random.PRNGKey(0)
    k_xs, k_xq, k_lbl, k_w1, k_b1, k_w2, k_b2 = jax.random.split(key, 7)

    xs = jax.random.normal(k_xs, (B, Ns, inp_dim), jnp.float32)
    xq = jax.random.normal(k_xq, (B, Nq, out_dim), jnp.float32)
    labels = jax.random.randint(k_lbl, (B, Ns), 0, num_classes)
    ys = jax.nn.one_hot(labels, num_classes, dtype=jnp.float32)

    # deterministic synthetic parameters (Linear(inp,hid), Linear(hid,out))
    w1 = 0.1 * jax.random.normal(k_w1, (inp_dim, hidden_dim), jnp.float32)
    b1 = 0.1 * jax.random.normal(k_b1, (1, hidden_dim), jnp.float32)
    w2 = 0.1 * jax.random.normal(k_w2, (hidden_dim, out_dim), jnp.float32)
    b2 = 0.1 * jax.random.normal(k_b2, (1, out_dim), jnp.float32)

    out = protonet_forward(xs, ys, xq, w1, b1, w2, b2)
    out = jax.block_until_ready(out)

    ref = protonet_ref(xs, ys, xq, w1, b1, w2, b2)
    assert out.shape == (B, Nq, 4), out.shape
    max_err = float(jnp.max(jnp.abs(out - ref)))
    # Tolerance slightly loose: the sigmoid(d1-d0) form and the sum-trick
    # prototype reassociate the f32 reductions vs. the reference (p-q)^2 path.
    assert max_err < 5e-5, f"max abs err {max_err}"

    print("KERNEL_OK")
</pallas_src>

<mosaic_0001>
module attributes {stable_mosaic.version = 11 : i64} {
  func.func @protonet_kernel(%arg0: i32, %arg1: memref<32x16xf32, #tpu.memory_space<vmem>>, %arg2: memref<32x2xf32, #tpu.memory_space<vmem>>, %arg3: memref<4x8x8xf32, #tpu.memory_space<vmem>>, %arg4: memref<16x32xf32, #tpu.memory_space<vmem>>, %arg5: memref<1x32xf32, #tpu.memory_space<vmem>>, %arg6: memref<32x8xf32, #tpu.memory_space<vmem>>, %arg7: memref<1x8xf32, #tpu.memory_space<vmem>>, %arg8: memref<4x4x8xf32, #tpu.memory_space<vmem>>) attributes {dimension_semantics = [#tpu.dimension_semantics<parallel>], iteration_bounds = array<i64: 1>, scalar_prefetch = 0 : i64, scratch_operands = 0 : i64, tpu.core_type = #tpu.core_type<tc>, window_params = [{transform_indices = @transform_0, window_bounds = array<i64: 32, 16>}, {transform_indices = @transform_1, window_bounds = array<i64: 32, 2>}, {transform_indices = @transform_2, window_bounds = array<i64: 4, 8, 8>}, {pipeline_mode = #tpu.pipeline_mode<synchronous>, transform_indices = @transform_3, window_bounds = array<i64: 16, 32>}, {pipeline_mode = #tpu.pipeline_mode<synchronous>, transform_indices = @transform_4, window_bounds = array<i64: 1, 32>}, {pipeline_mode = #tpu.pipeline_mode<synchronous>, transform_indices = @transform_5, window_bounds = array<i64: 32, 8>}, {pipeline_mode = #tpu.pipeline_mode<synchronous>, transform_indices = @transform_6, window_bounds = array<i64: 1, 8>}, {transform_indices = @transform_7, window_bounds = array<i64: 4, 4, 8>}]} {
    %c0 = arith.constant 0 : index
    %c0_0 = arith.constant 0 : index
    %0 = vector.load %arg1[%c0, %c0_0] : memref<32x16xf32, #tpu.memory_space<vmem>>, vector<32x16xf32>
    %c0_1 = arith.constant 0 : index
    %c0_2 = arith.constant 0 : index
    %1 = vector.load %arg4[%c0_1, %c0_2] : memref<16x32xf32, #tpu.memory_space<vmem>>, vector<16x32xf32>
    %cst = arith.constant dense<0.000000e+00> : vector<32x32xf32>
    %2 = tpu.matmul %0, %1, %cst {dimension_numbers = #tpu.dot_dimension_numbers<[1], [0], [0], [1], [0, 0, 1, 1], [], []>} : vector<32x16xf32>, vector<16x32xf32>, vector<32x32xf32> -> vector<32x32xf32>
    %c0_3 = arith.constant 0 : index
    %c0_4 = arith.constant 0 : index
    %3 = vector.load %arg5[%c0_3, %c0_4] : memref<1x32xf32, #tpu.memory_space<vmem>>, vector<1x32xf32>
    %4 = vector.broadcast %3 : vector<1x32xf32> to vector<32x32xf32>
    %5 = arith.addf %2, %4 : vector<32x32xf32>
    %cst_5 = arith.constant 0.00999999977 : f32
    %6 = vector.broadcast %cst_5 : f32 to vector<32x32xf32>
    %7 = arith.mulf %6, %5 : vector<32x32xf32>
    %8 = arith.maximumf %5, %7 : vector<32x32xf32>
    %c0_6 = arith.constant 0 : index
    %c0_7 = arith.constant 0 : index
    %9 = vector.load %arg6[%c0_6, %c0_7] : memref<32x8xf32, #tpu.memory_space<vmem>>, vector<32x8xf32>
    %cst_8 = arith.constant dense<0.000000e+00> : vector<32x8xf32>
    %10 = tpu.matmul %8, %9, %cst_8 {dimension_numbers = #tpu.dot_dimension_numbers<[1], [0], [0], [1], [0, 0, 1, 1], [], []>} : vector<32x32xf32>, vector<32x8xf32>, vector<32x8xf32> -> vector<32x8xf32>
    %c0_9 = arith.constant 0 : index
    %c0_10 = arith.constant 0 : index
    %11 = vector.load %arg7[%c0_9, %c0_10] : memref<1x8xf32, #tpu.memory_space<vmem>>, vector<1x8xf32>
    %12 = vector.broadcast %11 : vector<1x8xf32> to vector<32x8xf32>
    %13 = arith.addf %10, %12 : vector<32x8xf32>
    %c0_11 = arith.constant 0 : index
    %c0_12 = arith.constant 0 : index
    %14 = vector.load %arg2[%c0_11, %c0_12] : memref<32x2xf32, #tpu.memory_space<vmem>>, vector<32x2xf32>
    %15 = vector.extract_strided_slice %14 {offsets = [0, 0], sizes = [32, 1], strides = [1, 1]} : vector<32x2xf32> to vector<32x1xf32>
    %cst_13 = arith.constant dense<0xFF800000> : vector<32xf32>
    %16 = vector.multi_reduction <maximumf>, %14, %cst_13 [1] : vector<32x2xf32> to vector<32xf32>
    %17 = vector.shape_cast %16 : vector<32xf32> to vector<32x1xf32>
    %18 = arith.cmpf oge, %15, %17 : vector<32x1xf32>
    %19 = arith.extui %18 : vector<32x1xi1> to vector<32x1xi32>
    %20 = arith.sitofp %19 : vector<32x1xi32> to vector<32x1xf32>
    %21 = vector.shape_cast %13 : vector<32x8xf32> to vector<4x8x8xf32>
    %22 = vector.shape_cast %20 : vector<32x1xf32> to vector<4x8x1xf32>
    %23 = vector.broadcast %22 : vector<4x8x1xf32> to vector<4x8x8xf32>
    %24 = arith.mulf %23, %21 : vector<4x8x8xf32>
    %cst_14 = arith.constant dense<0.000000e+00> : vector<4x8xf32>
    %25 = vector.multi_reduction <add>, %24, %cst_14 [1] : vector<4x8x8xf32> to vector<4x8xf32>
    %cst_15 = arith.constant dense<0.000000e+00> : vector<4x8xf32>
    %26 = vector.multi_reduction <add>, %21, %cst_15 [1] : vector<4x8x8xf32> to vector<4x8xf32>
    %27 = arith.subf %26, %25 : vector<4x8xf32>
    %cst_16 = arith.constant dense<0.000000e+00> : vector<4x1xf32>
    %28 = vector.multi_reduction <add>, %22, %cst_16 [1] : vector<4x8x1xf32> to vector<4x1xf32>
    %cst_17 = arith.constant 8.000000e+00 : f32
    %29 = vector.broadcast %cst_17 : f32 to vector<4x1xf32>
    %30 = arith.subf %29, %28 : vector<4x1xf32>
    %cst_18 = arith.constant 0.000000e+00 : f32
    %31 = vector.broadcast %cst_18 : f32 to vector<4x1xf32>
    %32 = arith.cmpf oeq, %28, %31 : vector<4x1xf32>
    %cst_19 = arith.constant 1.000000e+00 : f32
    %33 = vector.broadcast %cst_19 : f32 to vector<4x1xf32>
    %34 = arith.select %32, %33, %28 : vector<4x1xi1>, vector<4x1xf32>
    %cst_20 = arith.constant 0.000000e+00 : f32
    %35 = vector.broadcast %cst_20 : f32 to vector<4x1xf32>
    %36 = arith.cmpf oeq, %30, %35 : vector<4x1xf32>
    %cst_21 = arith.constant 1.000000e+00 : f32
    %37 = vector.broadcast %cst_21 : f32 to vector<4x1xf32>
    %38 = arith.select %36, %37, %30 : vector<4x1xi1>, vector<4x1xf32>
    %39 = vector.broadcast %34 : vector<4x1xf32> to vector<4x8xf32>
    %40 = arith.divf %25, %39 : vector<4x8xf32>
    %41 = vector.broadcast %38 : vector<4x1xf32> to vector<4x8xf32>
    %42 = arith.divf %27, %41 : vector<4x8xf32>
    %43 = arith.subf %42, %40 : vector<4x8xf32>
    %44 = arith.mulf %42, %42 : vector<4x8xf32>
    %45 = arith.mulf %40, %40 : vector<4x8xf32>
    %46 = arith.subf %44, %45 : vector<4x8xf32>
    %cst_22 = arith.constant dense<0.000000e+00> : vector<4xf32>
    %47 = vector.multi_reduction <add>, %46, %cst_22 [1] : vector<4x8xf32> to vector<4xf32>
    %48 = vector.shape_cast %47 : vector<4xf32> to vector<4x1xf32>
    %c0_23 = arith.constant 0 : index
    %c0_24 = arith.constant 0 : index
    %c0_25 = arith.constant 0 : index
    %49 = vector.load %arg3[%c0_23, %c0_24, %c0_25] : memref<4x8x8xf32, #tpu.memory_space<vmem>>, vector<4x8x8xf32>
    %50 = vector.shape_cast %43 : vector<4x8xf32> to vector<4x1x8xf32>
    %51 = vector.broadcast %50 : vector<4x1x8xf32> to vector<4x8x8xf32>
    %52 = arith.mulf %49, %51 : vector<4x8x8xf32>
    %cst_26 = arith.constant dense<0.000000e+00> : vector<4x8xf32>
    %53 = vector.multi_reduction <add>, %52, %cst_26 [2] : vector<4x8x8xf32> to vector<4x8xf32>
    %cst_27 = arith.constant 2.000000e+00 : f32
    %54 = vector.broadcast %cst_27 : f32 to vector<4x8xf32>
    %55 = arith.mulf %54, %53 : vector<4x8xf32>
    %56 = vector.broadcast %48 : vector<4x1xf32> to vector<4x8xf32>
    %57 = arith.subf %56, %55 : vector<4x8xf32>
    %cst_28 = arith.constant 0.000000e+00 : f32
    %58 = vector.broadcast %cst_28 : f32 to vector<4x8xf32>
    %59 = arith.subf %58, %57 : vector<4x8xf32>
    %60 = math.exp %59 : vector<4x8xf32>
    %cst_29 = arith.constant 1.000000e+00 : f32
    %61 = vector.broadcast %cst_29 : f32 to vector<4x8xf32>
    %62 = arith.addf %61, %60 : vector<4x8xf32>
    %cst_30 = arith.constant 1.000000e+00 : f32
    %63 = vector.broadcast %cst_30 : f32 to vector<4x8xf32>
    %64 = arith.divf %63, %62 : vector<4x8xf32>
    %cst_31 = arith.constant 0.000000e+00 : f32
    %65 = vector.broadcast %cst_31 : f32 to vector<4x8xf32>
    %c0_32 = arith.constant 0 : index
    %c0_33 = arith.constant 0 : index
    %c0_34 = arith.constant 0 : index
    %66 = vector.load %arg8[%c0_32, %c0_33, %c0_34] : memref<4x4x8xf32, #tpu.memory_space<vmem>>, vector<4x1x8xf32>
    %67 = vector.shape_cast %66 : vector<4x1x8xf32> to vector<4x8xf32>
    %68 = vector.shape_cast %64 : vector<4x8xf32> to vector<4x1x8xf32>
    tpu.vector_store %arg8[%c0_32, %c0_33, %c0_34], %68 {strides = array<i32>} : memref<4x4x8xf32, #tpu.memory_space<vmem>>, vector<4x1x8xf32>,
    %cst_35 = arith.constant 1.000000e+00 : f32
    %69 = vector.broadcast %cst_35 : f32 to vector<4x8xf32>
    %70 = arith.subf %69, %64 : vector<4x8xf32>
    %c0_36 = arith.constant 0 : index
    %c1 = arith.constant 1 : index
    %c0_37 = arith.constant 0 : index
    %71 = vector.load %arg8[%c0_36, %c1, %c0_37] : memref<4x4x8xf32, #tpu.memory_space<vmem>>, vector<4x1x8xf32>
    %72 = vector.shape_cast %71 : vector<4x1x8xf32> to vector<4x8xf32>
    %73 = vector.shape_cast %70 : vector<4x8xf32> to vector<4x1x8xf32>
    tpu.vector_store %arg8[%c0_36, %c1, %c0_37], %73 {strides = array<i32>} : memref<4x4x8xf32, #tpu.memory_space<vmem>>, vector<4x1x8xf32>,
    %c0_38 = arith.constant 0 : index
    %c2 = arith.constant 2 : index
    %c0_39 = arith.constant 0 : index
    %74 = vector.load %arg8[%c0_38, %c2, %c0_39] : memref<4x4x8xf32, #tpu.memory_space<vmem>>, vector<4x1x8xf32>
    %75 = vector.shape_cast %74 : vector<4x1x8xf32> to vector<4x8xf32>
    %76 = vector.shape_cast %65 : vector<4x8xf32> to vector<4x1x8xf32>
    tpu.vector_store %arg8[%c0_38, %c2, %c0_39], %76 {strides = array<i32>} : memref<4x4x8xf32, #tpu.memory_space<vmem>>, vector<4x1x8xf32>,
    %c0_40 = arith.constant 0 : index
    %c3 = arith.constant 3 : index
    %c0_41 = arith.constant 0 : index
    %77 = vector.load %arg8[%c0_40, %c3, %c0_41] : memref<4x4x8xf32, #tpu.memory_space<vmem>>, vector<4x1x8xf32>
    %78 = vector.shape_cast %77 : vector<4x1x8xf32> to vector<4x8xf32>
    %79 = vector.shape_cast %65 : vector<4x8xf32> to vector<4x1x8xf32>
    tpu.vector_store %arg8[%c0_40, %c3, %c0_41], %79 {strides = array<i32>} : memref<4x4x8xf32, #tpu.memory_space<vmem>>, vector<4x1x8xf32>,
    return
  }
  func.func @transform_0(%arg0: i32) -> (i32, i32) {
    %c0_i32 = arith.constant 0 : i32
    %c0_i32_0 = arith.constant 0 : i32
    return %arg0, %c0_i32 : i32, i32
  }
  func.func @transform_1(%arg0: i32) -> (i32, i32) {
    %c0_i32 = arith.constant 0 : i32
    %c0_i32_0 = arith.constant 0 : i32
    return %arg0, %c0_i32 : i32, i32
  }
  func.func @transform_2(%arg0: i32) -> (i32, i32, i32) {
    %c0_i32 = arith.constant 0 : i32
    %c0_i32_0 = arith.constant 0 : i32
    %c0_i32_1 = arith.constant 0 : i32
    return %arg0, %c0_i32, %c0_i32_0 : i32, i32, i32
  }
  func.func @transform_3(%arg0: i32) -> (i32, i32) {
    %c0_i32 = arith.constant 0 : i32
    %c0_i32_0 = arith.constant 0 : i32
    %c0_i32_1 = arith.constant 0 : i32
    return %c0_i32, %c0_i32_0 : i32, i32
  }
  func.func @transform_4(%arg0: i32) -> (i32, i32) {
    %c0_i32 = arith.constant 0 : i32
    %c0_i32_0 = arith.constant 0 : i32
    %c0_i32_1 = arith.constant 0 : i32
    return %c0_i32, %c0_i32_0 : i32, i32
  }
  func.func @transform_5(%arg0: i32) -> (i32, i32) {
    %c0_i32 = arith.constant 0 : i32
    %c0_i32_0 = arith.constant 0 : i32
    %c0_i32_1 = arith.constant 0 : i32
    return %c0_i32, %c0_i32_0 : i32, i32
  }
  func.func @transform_6(%arg0: i32) -> (i32, i32) {
    %c0_i32 = arith.constant 0 : i32
    %c0_i32_0 = arith.constant 0 : i32
    %c0_i32_1 = arith.constant 0 : i32
    return %c0_i32, %c0_i32_0 : i32, i32
  }
  func.func @transform_7(%arg0: i32) -> (i32, i32, i32) {
    %c0_i32 = arith.constant 0 : i32
    %c0_i32_0 = arith.constant 0 : i32
    %c0_i32_1 = arith.constant 0 : i32
    return %arg0, %c0_i32, %c0_i32_0 : i32, i32, i32
  }
}

</mosaic_0001>

<bundles_post_ra>
// kernel: tpu_custom_call.1
= control target key start
LH: loop header
LB: loop body
LE: loop exit
PB: predicated region body
PF: predicated region fallthrough
CT: control target
= control target key end

     0   :  { %vm40_vm0 = vcmask 130048   ;;  %vm259_vm1 = vcmask 15360   ;;  %s921_s0 = inlined_call_operand.vmem [shape: f32[32,16], index: 0, kind: input, shape index: {}]   ;;  %s922_s1 = inlined_call_operand.vmem [shape: f32[32,2], index: 1, kind: input, shape index: {}]   ;;  %s923_s2 = inlined_call_operand.vmem [shape: f32[4,8,8], index: 2, kind: input, shape index: {}]   ;;  %s924_s3 = inlined_call_operand.vmem [shape: f32[16,32], index: 3, kind: input, shape index: {}]   ;;  %s925_s4 = inlined_call_operand.vmem [shape: f32[1,32], index: 4, kind: input, shape index: {}]   ;;  %s926_s5 = inlined_call_operand.vmem [shape: f32[32,8], index: 5, kind: input, shape index: {}]   ;;  %s927_s6 = inlined_call_operand.vmem [shape: f32[1,8], index: 6, kind: input, shape index: {}]   ;;  %s928_s7 = inlined_call_operand.hbm [shape: f32[4,4,8], index: 7, kind: output, shape index: {}]  }
   0x1   :  { %v32_v0 = vld [vmem:[%s924_s3 + $0x8] sm:$0xff]  ;;  %v31_v1 = vld [vmem:[%s924_s3] sm:$0xff]  ;;  %v257_v6 = vld [vmem:[%s922_s1 + $0x10] sm:$0xff] }
   0x2   :  { %v27_v2 = vld [vmem:[%s921_s0] sm:$0xff]  ;;  %682 = vmatprep.subr.mxu0 %v32_v0  ;;  %v28_v3 = vld [vmem:[%s921_s0 + $0x8] sm:$0xff]  ;;  %v29_v7 = vld [vmem:[%s921_s0 + $0x10] sm:$0xff]  ;;  %v266_v9 = vsel %vm259_vm1, %v257_v6, -inf }
   0x3   :  { %686 = vmatprep.mubr.msk.f32.mxu0 %vm40_vm0, %v27_v2  ;;  %683 = vmatpush3.msra.mxu0 %v32_v0  ;;  %v255_v4 = vld [vmem:[%s922_s1] sm:$0xff]  ;;  %v256_v5 = vld [vmem:[%s922_s1 + $0x8] sm:$0xff]  ;;  %v258_v10 = vld [vmem:[%s922_s1 + $0x18] sm:$0xff] }
   0x4   :  { %684 = vmatprep.subr.mxu0 %v31_v1  ;;  %v260_v8 = vsel %vm259_vm1, %v255_v4, -inf }
   0x5   :  { %12 = vsyncpa [#allocation3], 0  ;;  %685 = vmatpush3.msra.mxu0 %v31_v1  ;;  %261 = vmax.xlane.f32.xlu0 %v260_v8  ;;  %v263_v11 = vsel %vm259_vm1, %v256_v5, -inf  ;;  %v30_v12 = vld [vmem:[%s921_s0 + $0x18] sm:$0xff]  ;;  %v269_v13 = vsel %vm259_vm1, %v258_v10, -inf  ;;  %v148_v15 = vld [vmem:[%s926_s5 + $0x10] sm:$0xff] }
   0x6   :  { %687 = vmatmul.mubr.msk.f32.vlgmr.msra.gmra.mxu0 %vm40_vm0, %v28_v3  ;;  %267 = vmax.xlane.f32.xlu1 %v266_v9  ;;  %v149_v14 = vld [vmem:[%s926_s5 + $0x18] sm:$0xff]  ;;  %v147_v16 = vld [vmem:[%s926_s5 + $0x8] sm:$0xff]  ;;  %v146_v17 = vld [vmem:[%s926_s5] sm:$0xff]  ;;  %vm591_vm2 = vcmask 57344   ;;  %v766_v18 = vmov 0.0   ;;  %v767_v19 = vmov 0  }
   0x7   :  { %689 = vmatprep.mubr.msk.f32.mxu0 %vm40_vm0, %v29_v7  ;;  %692 = vmatprep.subr.mxu1 %v149_v14  ;;  %630 = vst.msk [vmem:[#allocation2 + $0x2] sm:$0x1] %vm591_vm2, %v766_v18  ;;  %631 = vst.msk [vmem:[#allocation2 + $0x6] sm:$0x1] %vm591_vm2, %v766_v18  ;;  %vm369_vm3 = vcmask 7168   ;;  %vm308_vm1 = vcmask 64512  }
   0x8   :  { %693 = vmatpush3.msra.mxu1 %v149_v14  ;;  %632 = vst.msk [vmem:[#allocation2 + $0xa] sm:$0x1] %vm591_vm2, %v766_v18  ;;  %633 = vst.msk [vmem:[#allocation2 + $0xe] sm:$0x1] %vm591_vm2, %v766_v18  ;;  %718 = vset.pattern.permute.xlu1 %v767_v19 }
   0x9   :  { %264 = vmax.xlane.f32.xlu0 %v263_v11  ;;  %694 = vmatprep.subr.mxu1 %v148_v15  ;;  %634 = vst.msk [vmem:[#allocation2 + $0x3] sm:$0x1] %vm591_vm2, %v766_v18  ;;  %635 = vst.msk [vmem:[#allocation2 + $0x7] sm:$0x1] %vm591_vm2, %v766_v18 }
   0xa   :  { %690 = vmatmul.mubr.msk.f32.gmra.mxu0 %vm40_vm0, %v30_v12  ;;  %270 = vmax.xlane.f32.xlu1 %v269_v13  ;;  %636 = vst.msk [vmem:[#allocation2 + $0xb] sm:$0x1] %vm591_vm2, %v766_v18  ;;  %637 = vst.msk [vmem:[#allocation2 + $0xf] sm:$0x1] %vm591_vm2, %v766_v18  ;;  %vm157_vm0 = vcmask 261120  }
   0xb   :  { %695 = vmatpush3.msra.mxu1 %v148_v15  ;;  %712 = vset.pattern.permute.xlu0 %v767_v19 }
   0xc   :  { %696 = vmatprep.subr.mxu1 %v147_v16 }
   0xd   :  { %697 = vmatpush3.msra.mxu1 %v147_v16 }
   0xe   :  { %698 = vmatprep.subr.mxu1 %v146_v17 }
   0xf   :  { %699 = vmatpush3.msra.mxu1 %v146_v17 }
  0x8e   :  { %v262_v20 = vpop.xlane.xlu0 %261 }
  0x8f   :  { %vm272_vm4 = vcmp.ge.f32.partialorder %v255_v4, %v262_v20  ;;  %v268_v21 = vpop.xlane.xlu1 %267 }
  0x90   :  { %v664_v22 = vsel %vm272_vm4, 1.0, %v766_v18  ;;  %vm274_vm5 = vcmp.ge.f32.partialorder %v257_v6, %v268_v21  ;;  %v654_v6 = vld [vmem:[%s925_s4] ss:$0 sm:$0xff]  ;;  %vm496_vm4 = vcmask 1042434  }
  0x91   :  { %v370_v23 = vsel %vm369_vm3, %v664_v22, 0.0  ;;  %v666_v24 = vsel %vm274_vm5, 1.0, %v766_v18  ;;  %vm498_vm5 = vcmask 1043459  }
  0x92   :  { %v371_v25 = vrot.slane %v370_v23, 4  ;;  %v265_v26 = vpop.xlane.xlu0 %264  ;;  %v384_v27 = vsel %vm369_vm3, %v666_v24, 0.0 }
  0x93   :  { %vm273_vm6 = vcmp.ge.f32.partialorder %v256_v5, %v265_v26  ;;  %v385_v28 = vrot.slane %v384_v27, 4  ;;  %v271_v29 = vpop.xlane.xlu1 %270 }
  0x94   :  { %v372_v30 = vadd.f32 %v371_v25, %v370_v23  ;;  %v665_v31 = vsel %vm273_vm6, 1.0, %v766_v18  ;;  %vm275_vm7 = vcmp.ge.f32.partialorder %v258_v10, %v271_v29  ;;  %vm501_vm6 = vcmask 60416  }
  0x95   :  { %v713_v32 = vpack.i.bf16 %v665_v31, %v664_v22  ;;  %v377_v33 = vsel %vm369_vm3, %v665_v31, 0.0  ;;  %v386_v34 = vadd.f32 %v385_v28, %v384_v27  ;;  %v667_v35 = vsel %vm275_vm7, 1.0, %v766_v18 }
  0x96   :  { %v373_v36 = vrot.slane %v372_v30, 2  ;;  %v378_v37 = vrot.slane %v377_v33, 4  ;;  %v719_v38 = vpack.i.bf16 %v667_v35, %v666_v24  ;;  %v391_v39 = vsel %vm369_vm3, %v667_v35, 0.0 }
  0x97   :  { %v387_v40 = vrot.slane %v386_v34, 2  ;;  %v392_v41 = vrot.slane %v391_v39, 4  ;;  %714 = vperm.xlu0 %712, %v713_v32   ;;  %v659_v32 = vld [vmem:[%s927_s6] ss:$0 sm:$0xff]  ;;  %vm494_vm3 = vcmask 1041409  }
  0x98   :  { %v374_v42 = vadd.f32 %v373_v36, %v372_v30  ;;  %v379_v43 = vadd.f32 %v378_v37, %v377_v33  ;;  %720 = vperm.xlu1 %718, %v719_v38  }
  0x99   :  { %v388_v44 = vadd.f32 %v387_v40, %v386_v34  ;;  %v393_v45 = vadd.f32 %v392_v41, %v391_v39 }
  0x9a   :  { %v375_v46 = vrot.slane %v374_v42, 1  ;;  %v380_v47 = vrot.slane %v379_v43, 2 }
  0x9b   :  { %v389_v48 = vrot.slane %v388_v44, 1  ;;  %v394_v49 = vrot.slane %v393_v45, 2 }
  0x9c   :  { %v381_v50 = vadd.f32 %v380_v47, %v379_v43  ;;  %v376_v51 = vadd.f32 %v375_v46, %v374_v42 }
  0x9d   :  { %v395_v52 = vadd.f32 %v394_v49, %v393_v45  ;;  %v390_v54 = vadd.f32 %v389_v48, %v388_v44 }
  0x9e   :  { %v382_v53 = vrot.slane %v381_v50, 1  ;;  %vm402_vm8 = vcmp.eq.f32.partialorder %v376_v51, 0.0  ;;  %v398_v59 = vsub.f32 8.0, %v376_v51 }
  0x9f   :  { %v396_v55 = vrot.slane %v395_v52, 1  ;;  %v406_v56 = vsel %vm402_vm8, 1.0, %v376_v51  ;;  %vm404_vm10 = vcmp.eq.f32.partialorder %v390_v54, 0.0  ;;  %v400_v2 = vsub.f32 8.0, %v390_v54 }
  0xa0   :  { %420 = vperm.xlu1 %718, %v406_v56   ;;  %v383_v57 = vadd.f32 %v382_v53, %v381_v50  ;;  %v408_v62 = vsel %vm404_vm10, 1.0, %v390_v54  ;;  %vm410_vm12 = vcmp.eq.f32.partialorder %v398_v59, 0.0 }
  0xa1   :  { %v397_v58 = vadd.f32 %v396_v55, %v395_v52  ;;  %v414_v1 = vsel %vm410_vm12, 1.0, %v398_v59  ;;  %vm412_vm14 = vcmp.eq.f32.partialorder %v400_v2, 0.0 }
  0xa2   :  { %vm403_vm9 = vcmp.eq.f32.partialorder %v383_v57, 0.0  ;;  %v399_v63 = vsub.f32 8.0, %v383_v57  ;;  %v416_v4 = vsel %vm412_vm14, 1.0, %v400_v2 }
  0xa3   :  { %v407_v60 = vsel %vm403_vm9, 1.0, %v383_v57  ;;  %v401_v61 = vsub.f32 8.0, %v397_v58  ;;  %vm405_vm15 = vcmp.eq.f32.partialorder %v397_v58, 0.0 }
  0xa4   :  { %425 = vperm.xlu1 %718, %v407_v60   ;;  %vm411_vm13 = vcmp.eq.f32.partialorder %v399_v63, 0.0  ;;  %v409_v5 = vsel %vm405_vm15, 1.0, %v397_v58 }
  0xa5   :  { %vm413_vm11 = vcmp.eq.f32.partialorder %v401_v61, 0.0  ;;  %v415_v3 = vsel %vm411_vm13, 1.0, %v399_v63 }
  0xa6   :  { %v417_v0 = vsel %vm413_vm11, 1.0, %v401_v61 }
  0xa7   :  { %463 = vperm.xlu0 %712, %v417_v0  }
  0xa8   :  { %430 = vperm.xlu1 %718, %v408_v62  }
  0xac   :  { %448 = vperm.xlu1 %718, %v414_v1  }
  0xb0   :  { %453 = vperm.xlu1 %718, %v415_v3  }
  0xb4   :  { %458 = vperm.xlu1 %718, %v416_v4  }
  0xb8   :  { %435 = vperm.xlu1 %718, %v409_v5  }
  0xc6   :  { %v688_v7 = vpop.f32.mrf.mxu0 }
  0xc7   :  { %v125_v8 = vadd.f32 %v688_v7, %v654_v6 }
  0xc8   :  { %v119_v9 = vpop.f32.mrf.mxu0 }
  0xc9   :  { %v120_v10 = vadd.f32 %v654_v6, %v119_v9  ;;  %v139_v11 = vmul.f32 0.01, %v125_v8 }
  0xca   :  { %v691_v12 = vpop.f32.mrf.mxu0 }
  0xcb   :  { %v138_v13 = vmul.f32 0.01, %v120_v10  ;;  %v135_v14 = vadd.f32 %v691_v12, %v654_v6  ;;  %v143_v18 = vmax.f32 %v125_v8, %v139_v11 }
  0xcc   :  { %v129_v15 = vpop.f32.mrf.mxu0 }
  0xcd   :  { %v130_v16 = vadd.f32 %v654_v6, %v129_v15  ;;  %v142_v17 = vmax.f32 %v120_v10, %v138_v13  ;;  %v141_v19 = vmul.f32 0.01, %v135_v14 }
  0xcf   :  { %v140_v20 = vmul.f32 0.01, %v130_v16  ;;  %700 = vmatprep.mubr.msk.f32.mxu1 %vm157_vm0, %v142_v17  ;;  %v145_v22 = vmax.f32 %v135_v14, %v141_v19 }
  0xd0   :  { %701 = vmatmul.mubr.msk.f32.vlgmr.msra.gmra.mxu1 %vm157_vm0, %v143_v18 }
  0xd1   :  { %v144_v21 = vmax.f32 %v130_v16, %v140_v20 }
  0xd3   :  { %703 = vmatprep.mubr.msk.f32.mxu1 %vm157_vm0, %v144_v21 }
  0xd4   :  { %704 = vmatmul.mubr.msk.f32.gmra.mxu1 %vm157_vm0, %v145_v22 }
 0x112   :  { %v715_v29 = vpop.permute.xlu0 %714 }
 0x113   :  { %v721_v23 = vpop.permute.xlu1 %720  ;;  %v717_v34 = vunpack.i.h.bf16 %v715_v29  ;;  %v716_v36 = vunpack.i.l.bf16 %v715_v29 }
 0x114   :  { %v723_v42 = vunpack.i.h.bf16 %v721_v23  ;;  %v722_v43 = vunpack.i.l.bf16 %v721_v23 }
 0x11b   :  { %v421_v24 = vpop.permute.xlu1 %420 }
 0x11c   :  { %724 = vrcp.f32 %v421_v24 }
 0x11f   :  { %v426_v25 = vpop.permute.xlu1 %425 }
 0x120   :  { %726 = vrcp.f32 %v426_v25 }
 0x122   :  { %v464_v31 = vpop.permute.xlu0 %463 }
 0x123   :  { %v431_v26 = vpop.permute.xlu1 %430  ;;  %728 = vrcp.f32 %v464_v31 }
 0x124   :  { %730 = vrcp.f32 %v431_v26 }
 0x127   :  { %v449_v27 = vpop.permute.xlu1 %448 }
 0x128   :  { %732 = vrcp.f32 %v449_v27 }
 0x129   :  { %v725_v6 = vpop.eup %724 }
 0x12b   :  { %v454_v28 = vpop.permute.xlu1 %453 }
 0x12c   :  { %734 = vrcp.f32 %v454_v28 }
 0x12d   :  { %v727_v11 = vpop.eup %726 }
 0x12f   :  { %v459_v30 = vpop.permute.xlu1 %458 }
 0x130   :  { %736 = vrcp.f32 %v459_v30  ;;  %v729_v16 = vpop.eup %728 }
 0x131   :  { %v731_v21 = vpop.eup %730 }
 0x133   :  { %v436_v38 = vpop.permute.xlu1 %435 }
 0x134   :  { %738 = vrcp.f32 %v436_v38 }
 0x135   :  { %v733_v25 = vpop.eup %732 }
 0x139   :  { %v735_v30 = vpop.eup %734 }
 0x190   :  { %v702_v33 = vpop.f32.mrf.mxu1 }
 0x191   :  { %v242_v35 = vadd.f32 %v702_v33, %v659_v32 }
 0x192   :  { %v236_v37 = vpop.f32.mrf.mxu1 }
 0x193   :  { %v305_v39 = vmul.f32 %v717_v34, %v242_v35  ;;  %v344_v40 = vsel %vm308_vm1, %v242_v35, 0.0  ;;  %v237_v41 = vadd.f32 %v659_v32, %v236_v37  ;;  %v737_v34 = vpop.eup %736 }
 0x194   :  { %v345_v44 = vrot.slane %v344_v40, 4  ;;  %v705_v45 = vpop.f32.mrf.mxu1 }
 0x195   :  { %v316_v46 = vsel %vm308_vm1, %v305_v39, 0.0  ;;  %v304_v47 = vmul.f32 %v716_v36, %v237_v41  ;;  %v337_v48 = vsel %vm308_vm1, %v237_v41, 0.0  ;;  %v252_v49 = vadd.f32 %v705_v45, %v659_v32 }
 0x196   :  { %v317_v50 = vrot.slane %v316_v46, 4  ;;  %v346_v51 = vadd.f32 %v345_v44, %v344_v40  ;;  %v338_v52 = vrot.slane %v337_v48, 4  ;;  %v246_v53 = vpop.f32.mrf.mxu1 }
 0x197   :  { %v309_v54 = vsel %vm308_vm1, %v304_v47, 0.0  ;;  %v307_v55 = vmul.f32 %v723_v42, %v252_v49  ;;  %v358_v56 = vsel %vm308_vm1, %v252_v49, 0.0  ;;  %v247_v57 = vadd.f32 %v659_v32, %v246_v53  ;;  %v739_v42 = vpop.eup %738 }
 0x198   :  { %v318_v58 = vadd.f32 %v317_v50, %v316_v46  ;;  %v347_v59 = vrot.slane %v346_v51, 2  ;;  %v310_v60 = vrot.slane %v309_v54, 4  ;;  %v339_v61 = vadd.f32 %v338_v52, %v337_v48 }
 0x199   :  { %v330_v62 = vsel %vm308_vm1, %v307_v55, 0.0  ;;  %v359_v63 = vrot.slane %v358_v56, 4  ;;  %v306_v0 = vmul.f32 %v722_v43, %v247_v57  ;;  %v351_v1 = vsel %vm308_vm1, %v247_v57, 0.0  ;;  %v505_v57 = vld [vmem:[%s923_s2] sm:$0xff] }
 0x19a   :  { %v319_v2 = vrot.slane %v318_v58, 2  ;;  %v348_v3 = vadd.f32 %v347_v59, %v346_v51  ;;  %v311_v4 = vadd.f32 %v310_v60, %v309_v54  ;;  %v340_v5 = vrot.slane %v339_v61, 2  ;;  %v506_v51 = vld [vmem:[%s923_s2 + $0x8] sm:$0xff] }
 0x19b   :  { %v331_v7 = vrot.slane %v330_v62, 4  ;;  %v360_v8 = vadd.f32 %v359_v63, %v358_v56  ;;  %v323_v9 = vsel %vm308_vm1, %v306_v0, 0.0  ;;  %v352_v10 = vrot.slane %v351_v1, 4 }
 0x19c   :  { %v320_v12 = vadd.f32 %v319_v2, %v318_v58  ;;  %v349_v13 = vrot.slane %v348_v3, 1  ;;  %v312_v14 = vrot.slane %v311_v4, 2  ;;  %v341_v15 = vadd.f32 %v340_v5, %v339_v61 }
 0x19d   :  { %v332_v17 = vadd.f32 %v331_v7, %v330_v62  ;;  %v361_v18 = vrot.slane %v360_v8, 2  ;;  %v324_v19 = vrot.slane %v323_v9, 4  ;;  %v353_v20 = vadd.f32 %v352_v10, %v351_v1  ;;  %v508_v7 = vld [vmem:[%s923_s2 + $0x18] sm:$0xff] }
 0x19e   :  { %v321_v22 = vrot.slane %v320_v12, 1  ;;  %v313_v23 = vadd.f32 %v312_v14, %v311_v4  ;;  %v342_v24 = vrot.slane %v341_v15, 1  ;;  %v350_v31 = vadd.f32 %v349_v13, %v348_v3 }
 0x19f   :  { %v333_v26 = vrot.slane %v332_v17, 2  ;;  %v362_v27 = vadd.f32 %v361_v18, %v360_v8  ;;  %v325_v28 = vadd.f32 %v324_v19, %v323_v9  ;;  %v354_v29 = vrot.slane %v353_v20, 2 }
 0x1a0   :  { %v314_v32 = vrot.slane %v313_v23, 1  ;;  %v322_v33 = vadd.f32 %v321_v22, %v320_v12  ;;  %v343_v39 = vadd.f32 %v342_v24, %v341_v15  ;;  %v507_v12 = vld [vmem:[%s923_s2 + $0x10] sm:$0xff]  ;;  %s769_s2 = smov [#allocation2]  }
 0x1a1   :  { %v334_v35 = vadd.f32 %v333_v26, %v332_v17  ;;  %v363_v36 = vrot.slane %v362_v27, 1  ;;  %v326_v37 = vrot.slane %v325_v28, 2  ;;  %v355_v38 = vadd.f32 %v354_v29, %v353_v20  ;;  %s643_s3 = sshll.u32 %s769_s2, 4  ;;  %s644_s3 = int_to_ptr.vmem [resolvable:$true] %s643_s3 }
 0x1a2   :  { %v366_v40 = vsub.f32 %v350_v31, %v322_v33  ;;  %v315_v41 = vadd.f32 %v314_v32, %v313_v23  ;;  %v441_v46 = vmul.f32 %v727_v11, %v322_v33  ;;  %s744_s12 = scalar_lea.vmem %s644_s3, 256  ;;  %p749_p1 = scmp.lt.s32.totalorder %s644_s3, %s644_s3 }
 0x1a3   :  { %v335_v43 = vrot.slane %v334_v35, 1  ;;  %v327_v44 = vadd.f32 %v326_v37, %v325_v28  ;;  %v356_v45 = vrot.slane %v355_v38, 1  ;;  %v364_v49 = vadd.f32 %v363_v36, %v362_v27  ;;  %p745_p0 = scmp.ne.s32.totalorder %s644_s3, %s744_s12  ;;  %p750_p2 = scmp.lt.s32.totalorder %s744_s12, %s744_s12 }
 0x1a4   :  { %v469_v47 = vmul.f32 %v735_v30, %v366_v40  ;;  %v365_v48 = vsub.f32 %v343_v39, %v315_v41  ;;  %v439_v54 = vmul.f32 %v725_v6, %v315_v41  ;;  %v483_v10 = vmul.f32 %v441_v46, %v441_v46 }
 0x1a5   :  { %v328_v50 = vrot.slane %v327_v44, 1  ;;  %v336_v52 = vadd.f32 %v335_v43, %v334_v35  ;;  %v357_v56 = vadd.f32 %v356_v45, %v355_v38  ;;  %v533_v30 = vlaneseq  ;;  %p751_p3 = por %p750_p2, %p749_p1 }
 0x1a6   :  { %v475_v53 = vsub.f32 %v469_v47, %v441_v46  ;;  %v467_v55 = vmul.f32 %v733_v25, %v365_v48  ;;  %v479_v3 = vmul.f32 %v469_v47, %v469_v47  ;;  %v482_v5 = vmul.f32 %v439_v54, %v439_v54 }
 0x1a7   :  { %v329_v58 = vadd.f32 %v328_v50, %v327_v44  ;;  %v368_v59 = vsub.f32 %v364_v49, %v336_v52  ;;  %v445_v1 = vmul.f32 %v739_v42, %v336_v52  ;;  %v534_v31 = vand.u32 127, %v533_v30  ;;  %p752_p4 = pnand %p751_p3, %p745_p0 }
 0x1a8   :  { %v510_v60 = vmul.f32 %v506_v51, %v475_v53  ;;  %v474_v61 = vsub.f32 %v467_v55, %v439_v54  ;;  %v478_v62 = vmul.f32 %v467_v55, %v467_v55  ;;  %v487_v20 = vsub.f32 %v479_v3, %v483_v10 }
 0x1a9   :  { %v367_v63 = vsub.f32 %v357_v56, %v329_v58  ;;  %v443_v0 = vmul.f32 %v731_v21, %v329_v58  ;;  %v473_v2 = vmul.f32 %v729_v16, %v368_v59  ;;  %v485_v19 = vmul.f32 %v445_v1, %v445_v1 }
 0x1aa   :  { %v516_v4 = vsel %vm308_vm1, %v510_v60, 0.0  ;;  %v509_v6 = vmul.f32 %v505_v57, %v474_v61  ;;  %v486_v14 = vsub.f32 %v478_v62, %v482_v5  ;;  %v536_v32 = vshrl.u32 %v533_v30, 7 }
 0x1ab   :  { %517 = vadd.xlane.f32.xlu0 %v516_v4  ;;  %v471_v8 = vmul.f32 %v737_v34, %v367_v63  ;;  %v477_v9 = vsub.f32 %v473_v2, %v445_v1  ;;  %v481_v13 = vmul.f32 %v473_v2, %v473_v2  ;;  %v484_v17 = vmul.f32 %v443_v0, %v443_v0 }
 0x1ac   :  { %v513_v11 = vsel %vm308_vm1, %v509_v6, 0.0  ;;  %v495_v25 = vsel %vm494_vm3, %v487_v20, %v486_v14  ;;  %v537_v36 = vsub.s32 %v534_v31, %v536_v32  ;;  %v768_v55 = vmov 1966171168  }
 0x1ad   :  { %514 = vadd.xlane.f32.xlu1 %v513_v11  ;;  %v476_v15 = vsub.f32 %v471_v8, %v443_v0  ;;  %v480_v16 = vmul.f32 %v471_v8, %v471_v8  ;;  %v512_v18 = vmul.f32 %v508_v7, %v477_v9  ;;  %v489_v24 = vsub.f32 %v481_v13, %v485_v19 }
 0x1ae   :  { %v564_v56 = vunpack.c.l.s4 %v768_v55 }
 0x1af   :  { %v511_v21 = vmul.f32 %v507_v12, %v476_v15  ;;  %v488_v22 = vsub.f32 %v480_v16, %v484_v17  ;;  %v522_v23 = vsel %vm308_vm1, %v512_v18, 0.0 }
 0x1b0   :  { %v565_v57 = vunpack.c.0.s8 %v564_v56 }
 0x1b1   :  { %v519_v26 = vsel %vm308_vm1, %v511_v21, 0.0  ;;  %523 = vadd.xlane.f32.xlu1 %v522_v23  ;;  %v497_v27 = vsel %vm496_vm4, %v488_v22, %v495_v25 }
 0x1b2   :  { %520 = vadd.xlane.f32.xlu0 %v519_v26  ;;  %v499_v28 = vsel %vm498_vm5, %v489_v24, %v497_v27  ;;  %v568_v58 = vsub.s32 %v565_v57, %v536_v32 }
 0x1b3   :  { %v502_v29 = vsel %vm501_vm6, %v499_v28, 0.0 }
 0x1b6   :  { %503 = vadd.xlane.f32.xlu0 %v502_v29 }
 0x234   :  { %v518_v33 = vpop.xlane.xlu0 %517 }
 0x235   :  { %v526_v37 = vmul.f32 2.0, %v518_v33 }
 0x236   :  { %v515_v34 = vpop.xlane.xlu1 %514 }
 0x237   :  { %v525_v35 = vmul.f32 2.0, %v515_v34  ;;  %v542_v43 = vrot.slane %v526_v37, %v537_v36 }
 0x239   :  { %v538_v39 = vrot.slane %v525_v35, %v537_v36 }
 0x23a   :  { %v524_v38 = vpop.xlane.xlu1 %523 }
 0x23b   :  { %v521_v40 = vpop.xlane.xlu0 %520  ;;  %v528_v41 = vmul.f32 2.0, %v524_v38  ;;  %v551_v46 = vsel %vm494_vm3, %v542_v43, %v538_v39 }
 0x23c   :  { %v527_v42 = vmul.f32 2.0, %v521_v40 }
 0x23d   :  { %v550_v44 = vrot.slane %v528_v41, %v537_v36 }
 0x23e   :  { %v546_v45 = vrot.slane %v527_v42, %v537_v36 }
 0x23f   :  { %v504_v48 = vpop.xlane.xlu0 %503 }
 0x240   :  { %v552_v47 = vsel %vm496_vm4, %v546_v45, %v551_v46 }
 0x241   :  { %v553_v49 = vsel %vm498_vm5, %v550_v44, %v552_v47 }
 0x242   :  { %v555_v50 = vsub.f32 %v504_v48, %v553_v49 }
 0x244   :  { %v556_v51 = vsub.f32 0.0, %v555_v50 }
 0x246   :  { %v557_v52 = vmul.f32 1.442695, %v556_v51 }
 0x248   :  { %740 = vpow2.f32 %v557_v52 }
 0x255   :  { %v741_v53 = vpop.eup %740 }
 0x256   :  { %v559_v54 = vadd.f32 1.0, %v741_v53 }
 0x258   :  { %742 = vrcp.f32 %v559_v54 }
 0x265   :  { %v743_v59 = vpop.eup %742 }
 0x266   :  { %v569_v60 = vrot.slane %v743_v59, %v568_v58  ;;  %v596_v61 = vsub.f32 1.0, %v743_v59 }
 0x268   :  { %v570_v62 = vcombine.high %v569_v60, %v569_v60  ;;  %v577_v63 = vrot.slane %v569_v60, %v568_v58  ;;  %v604_v0 = vrot.slane %v596_v61, %v568_v58 }
 0x26a   :  { %v584_v1 = vrot.slane %v570_v62, %v568_v58  ;;  %v585_v2 = vcombine.high %v577_v63, %v577_v63  ;;  %592 = vst.msk [vmem:[#allocation2] sm:$0x1] %vm591_vm2, %v577_v63  ;;  %v605_v3 = vcombine.high %v604_v0, %v604_v0  ;;  %v612_v4 = vrot.slane %v604_v0, %v568_v58 }
 0x26c   :  { %v586_v5 = vcombine.high %v584_v1, %v584_v1  ;;  %593 = vst.msk [vmem:[#allocation2 + $0x4] sm:$0x1] %vm591_vm2, %v584_v1  ;;  %594 = vst.msk [vmem:[#allocation2 + $0x8] sm:$0x1] %vm591_vm2, %v585_v2  ;;  %v619_v6 = vrot.slane %v605_v3, %v568_v58  ;;  %v620_v7 = vcombine.high %v612_v4, %v612_v4 }
 0x26d   :  { %626 = vst.msk [vmem:[#allocation2 + $0x1] sm:$0x1] %vm591_vm2, %v612_v4 }
 0x26e   :  { %595 = vst.msk [vmem:[#allocation2 + $0xc] sm:$0x1] %vm591_vm2, %v586_v5  ;;  %v621_v8 = vcombine.high %v619_v6, %v619_v6  ;;  %627 = vst.msk [vmem:[#allocation2 + $0x5] sm:$0x1] %vm591_vm2, %v619_v6 }
 0x26f   :  { %628 = vst.msk [vmem:[#allocation2 + $0x9] sm:$0x1] %vm591_vm2, %v620_v7 }
 0x270   :  { %629 = vst.msk [vmem:[#allocation2 + $0xd] sm:$0x1] %vm591_vm2, %v621_v8 }
 0x271   :  { %755 = shalt.err (!%p752_p4)
}
 0x272   :  { %s770_s13 = smov 64   ;;  %s771_s14 = smov 4  }
 0x273   :  { %649 = dma.vmem_to_hbm [thread:$0]  %s644_s3, 256, %s928_s7, [#allocation3], %s770_s13, %s770_s13, %s771_s14  }
 0x274   :  { %764 = dma.done.wait [#allocation3], 256  }
 0x275   :  { %765 = vsyncadd [#allocation3], 4294967040 }
 0x276   :  { %653 = vsyncpa [#allocation3], 1 }

</bundles_post_ra>
